<compile_context>
chip_gen: v6e
topology: v6e:2x2x1
jax: 0.10.0
libtpu: 0.0.40
codegen_flags: <defaults>
</compile_context>

<pallas_src>
import functools

import jax
import jax.numpy as jnp
from jax.experimental import pallas as pl
from jax.experimental.pallas import tpu as pltpu

BN_EPS = 1e-5
_TM_CANDS = (512, 256, 128, 64, 32, 16)
_TN_CANDS = (512, 256, 128)
_TK_CANDS = (2048, 1024, 512, 256, 128)
_VMEM_LIMIT = 48 * 1024 * 1024


def _round_up(x, m):
    return (x + m - 1) // m * m


def _pick_tile(dim, cands):
    for c in cands:
        if dim % c == 0:
            return c
    return cands[-1]


# ----------------------------- Pallas kernels -------------------------------

def _matmul_kernel(a_ref, b_ref, bias_ref, *rest, activation, bn_rows):
    """Grid = (G, M/tm, N/tn, K/tk).  bf16 operands, f32 accumulation in VMEM scratch,
    bias / BatchNorm+ReLU / tanh epilogue fused on the final K step."""
    if bn_rows is None:
        o_ref, acc_ref = rest
        gamma_ref = beta_ref = None
    else:
        gamma_ref, beta_ref, o_ref, acc_ref = rest

    k = pl.program_id(3)
    part = jnp.dot(a_ref[0], b_ref[0], preferred_element_type=jnp.float32)

    @pl.when(k == 0)
    def _():
        acc_ref[...] = part

    @pl.when(k > 0)
    def _():
        acc_ref[...] = acc_ref[...] + part

    @pl.when(k == pl.num_programs(3) - 1)
    def _():
        out = acc_ref[...] + bias_ref[0]
        if bn_rows is not None:
            tm = out.shape[0]
            if bn_rows < tm:  # mask zero-padded rows out of the batch statistics
                rows = jax.lax.broadcasted_iota(jnp.int32, out.shape, 0)
                valid = rows < bn_rows
                xs = jnp.where(valid, out, 0.0)
            else:
                xs = out
            inv_cnt = 1.0 / float(bn_rows)
            mean = jnp.sum(xs, axis=0, keepdims=True) * inv_cnt
            if bn_rows < tm:
                diff = jnp.where(valid, out - mean, 0.0)
            else:
                diff = out - mean
            var = jnp.sum(diff * diff, axis=0, keepdims=True) * inv_cnt  # biased var
            y = (out - mean) * jax.lax.rsqrt(var + BN_EPS) * gamma_ref[0] + beta_ref[0]
            out = jnp.maximum(y, 0.0)
        if activation == "tanh":
            out = jnp.tanh(out)
        o_ref[0] = out.astype(o_ref.dtype)


def matmul_bias(a, b, bias, *, activation="none", bn=None, out_dtype=jnp.float32):
    """(G?, M, K) @ (G?, K, N) + bias, with optional fused BatchNorm+ReLU or tanh.

    a/b are cast to bf16 (f32 accumulation on the MXU); output dtype selectable.
    bn=(gamma, beta) requires the full M to live in a single block.
    """
    squeeze = a.ndim == 2
    if squeeze:
        a, b, bias = a[None], b[None], bias[None]
    assert bn is None or squeeze
    G, M, K = a.shape
    N = b.shape[2]
    Mp, Kp, Np = _round_up(M, 16), _round_up(K, 128), _round_up(N, 128)
    tm = Mp if bn is not None else _pick_tile(Mp, _TM_CANDS)
    tn = _pick_tile(Np, _TN_CANDS)
    tk = _pick_tile(Kp, _TK_CANDS)

    a_p = jnp.pad(a.astype(jnp.bfloat16), ((0, 0), (0, Mp - M), (0, Kp - K)))
    b_p = jnp.pad(b.astype(jnp.bfloat16), ((0, 0), (0, Kp - K), (0, Np - N)))
    bias_p = jnp.pad(bias.astype(jnp.float32), ((0, 0), (0, Np - N)))[:, None, :]

    vec_spec = pl.BlockSpec((1, 1, tn), lambda g, i, j, k: (g, 0, j))
    inputs = [a_p, b_p, bias_p]
    in_specs = [
        pl.BlockSpec((1, tm, tk), lambda g, i, j, k: (g, i, k)),
        pl.BlockSpec((1, tk, tn), lambda g, i, j, k: (g, k, j)),
        vec_spec,
    ]
    bn_rows = None
    if bn is not None:
        gamma, beta = bn
        gp = jnp.pad(gamma.astype(jnp.float32), (0, Np - N)).reshape(1, 1, Np)
        bp = jnp.pad(beta.astype(jnp.float32), (0, Np - N)).reshape(1, 1, Np)
        inputs += [gp, bp]
        in_specs += [vec_spec, vec_spec]
        bn_rows = M

    kernel = functools.partial(_matmul_kernel, activation=activation, bn_rows=bn_rows)
    out = pl.pallas_call(
        kernel,
        out_shape=jax.ShapeDtypeStruct((G, Mp, Np), out_dtype),
        grid_spec=pltpu.PrefetchScalarGridSpec(
            num_scalar_prefetch=0,
            grid=(G, Mp // tm, Np // tn, Kp // tk),
            in_specs=in_specs,
            out_specs=pl.BlockSpec((1, tm, tn), lambda g, i, j, k: (g, i, j)),
            scratch_shapes=[pltpu.VMEM((tm, tn), jnp.float32)],
        ),
        compiler_params=pltpu.CompilerParams(
            dimension_semantics=("parallel", "parallel", "parallel", "arbitrary"),
            vmem_limit_bytes=_VMEM_LIMIT),
    )(*inputs)
    out = out[:, :M, :N]
    return out[0] if squeeze else out


def _bn_relu_kernel(x_ref, gamma_ref, beta_ref, o_ref):
    x = x_ref[...]
    mean = jnp.mean(x, axis=0, keepdims=True)
    var = jnp.mean(jnp.square(x - mean), axis=0, keepdims=True)  # biased var (PyTorch fwd)
    y = (x - mean) * jax.lax.rsqrt(var + BN_EPS) * gamma_ref[...] + beta_ref[...]
    o_ref[...] = jnp.maximum(y, 0.0).astype(o_ref.dtype)


def batchnorm_relu(x, gamma, beta, *, out_dtype=jnp.float32):
    """x: (rows, C) f32; rows % 16 == 0 and C % 128 == 0 for every call site here."""
    R, C = x.shape
    tn = 128
    return pl.pallas_call(
        _bn_relu_kernel,
        out_shape=jax.ShapeDtypeStruct((R, C), out_dtype),
        grid_spec=pltpu.PrefetchScalarGridSpec(
            num_scalar_prefetch=0,
            grid=(C // tn,),
            in_specs=[
                pl.BlockSpec((R, tn), lambda j: (0, j)),
                pl.BlockSpec((1, tn), lambda j: (0, j)),
                pl.BlockSpec((1, tn), lambda j: (0, j)),
            ],
            out_specs=pl.BlockSpec((R, tn), lambda j: (0, j)),
        ),
        compiler_params=pltpu.CompilerParams(dimension_semantics=("parallel",)),
    )(x, gamma.reshape(1, -1), beta.reshape(1, -1))


# ------------------------------ conv glue (JAX) ------------------------------

def _im2col(x, k, stride, pad):
    """x: (N,H,W,C) -> patches (N*OH*OW, k*k*C), row order (kh, kw, c)."""
    N, H, W, C = x.shape
    xp = jnp.pad(x, ((0, 0), (pad, pad), (pad, pad), (0, 0)))
    OH = (H + 2 * pad - k) // stride + 1
    OW = (W + 2 * pad - k) // stride + 1
    cols = [xp[:, i:i + stride * OH:stride, j:j + stride * OW:stride, :]
            for i in range(k) for j in range(k)]
    patches = jnp.stack(cols, axis=3)                      # (N, OH, OW, k*k, C)
    return patches.reshape(N * OH * OW, k * k * C), (N, OH, OW)


def conv2d_bn_relu(x, w, b, gamma, beta, *, stride=2, pad=1, out_dtype=jnp.float32):
    """Conv2d(k4,s2,p1) + BatchNorm2d + ReLU.  x: NHWC, w: PyTorch (OC, IC, KH, KW)."""
    OC, IC, KH, KW = w.shape
    patches, (N, OH, OW) = _im2col(x.astype(jnp.bfloat16), KH, stride, pad)
    w2 = jnp.transpose(w, (2, 3, 1, 0)).reshape(KH * KW * IC, OC).astype(jnp.bfloat16)
    if patches.shape[0] <= 2048:  # full M in one block -> fuse BN+ReLU into the epilogue
        out = matmul_bias(patches, w2, b, bn=(gamma, beta), out_dtype=out_dtype)
    else:
        out = batchnorm_relu(matmul_bias(patches, w2, b), gamma, beta, out_dtype=out_dtype)
    return out.reshape(N, OH, OW, OC)


def _tconv_parity_patches(x):
    """x: (N,H,W,IC) -> (4, N*H*W, 4*IC); parity g = ph*2+pw, K-order (dh, dw, ic)."""
    N, H, W, IC = x.shape
    xp = jnp.pad(x, ((0, 0), (1, 1), (1, 1), (0, 0)))
    groups = []
    for ph in range(2):
        for pw in range(2):
            taps = [xp[:, ph + dh:ph + dh + H, pw + dw:pw + dw + W, :]
                    for dh in range(2) for dw in range(2)]
            groups.append(jnp.stack(taps, axis=3).reshape(N * H * W, 4 * IC))
    return jnp.stack(groups, axis=0)


def _tconv_parity_weights(w):
    """w: PyTorch ConvTranspose2d (IC, OC, 4, 4) -> (4, 4*IC, OC).

    out[2m+ph, 2n+pw, oc] = sum_{dh,dw,ic} xpad[m+ph+dh, n+pw+dw, ic] * w[ic,oc,3-ph-2dh,3-pw-2dw]
    """
    IC, OC = w.shape[0], w.shape[1]
    groups = []
    for ph in range(2):
        for pw in range(2):
            taps = [w[:, :, 3 - ph - 2 * dh, 3 - pw - 2 * dw]
                    for dh in range(2) for dw in range(2)]
            groups.append(jnp.stack(taps, axis=0).reshape(4 * IC, OC))
    return jnp.stack(groups, axis=0)


def conv_transpose2d(x, w, b, *, bn=None, activation="none", out_dtype=jnp.float32):
    """ConvTranspose2d(k=4,s=2,p=1) as a sub-pixel conv: 4-way batched matmul over
    2x2 windows of the padded input + pixel shuffle.  x: NHWC, w: (IC, OC, 4, 4).

    BatchNorm+ReLU (if requested) is applied per-channel on the flat (4*N*H*W, OC)
    matmul output BEFORE the pixel shuffle -- identical statistics / result, but the
    shuffle then moves out_dtype (bf16) data instead of f32.
    """
    IC, OC, KH, KW = w.shape
    assert (KH, KW) == (4, 4)
    N, H, W, _ = x.shape
    patches = _tconv_parity_patches(x.astype(jnp.bfloat16))        # (4, N*H*W, 4*IC)
    wsub = _tconv_parity_weights(w).astype(jnp.bfloat16)           # (4, 4*IC, OC)
    bias4 = jnp.broadcast_to(b.astype(jnp.float32), (4, OC))
    if bn is not None:
        gamma, beta = bn
        out = matmul_bias(patches, wsub, bias4)                     # (4, N*H*W, OC) f32
        out = batchnorm_relu(out.reshape(4 * N * H * W, OC), gamma, beta,
                             out_dtype=out_dtype)
    else:
        out = matmul_bias(patches, wsub, bias4, activation=activation,
                          out_dtype=out_dtype)
    out = out.reshape(2, 2, N, H, W, OC)
    out = jnp.transpose(out, (2, 3, 0, 4, 1, 5)).reshape(N, 2 * H, 2 * W, OC)
    return out


# ------------------------------ parameters -----------------------------------

def init_params(key, in_channels, latent_dims):
    keys = iter(jax.random.split(key, 64))

    def dense(shape, fan_in):
        return jax.random.normal(next(keys), shape, jnp.float32) / jnp.sqrt(float(fan_in))

    p = {}
    enc_chs = [in_channels, 128, 256, 512, 1024]
    for li in range(4):
        ic, oc = enc_chs[li], enc_chs[li + 1]
        p[f"enc{li}_w"] = dense((oc, ic, 4, 4), ic * 16)
        p[f"enc{li}_b"] = dense((oc,), ic * 16)
        p[f"enc{li}_g"] = jnp.ones((oc,), jnp.float32)    # BN gamma init
        p[f"enc{li}_be"] = jnp.zeros((oc,), jnp.float32)  # BN beta init
    feat = 1024 * 4 * 4
    p["mu_w"] = dense((latent_dims, feat), feat)
    p["mu_b"] = dense((latent_dims,), feat)
    p["lv_w"] = dense((latent_dims, feat), feat)
    p["lv_b"] = dense((latent_dims,), feat)
    p["dlin_w"] = dense((feat, latent_dims), latent_dims)
    p["dlin_b"] = dense((feat,), latent_dims)
    dec_chs = [1024, 512, 256, 128, in_channels]
    for li in range(4):
        ic, oc = dec_chs[li], dec_chs[li + 1]
        p[f"dec{li}_w"] = dense((ic, oc, 4, 4), ic * 16)
        p[f"dec{li}_b"] = dense((oc,), ic * 16)
        if li < 3:
            p[f"dec{li}_g"] = jnp.ones((oc,), jnp.float32)
            p[f"dec{li}_be"] = jnp.zeros((oc,), jnp.float32)
    return p


# ------------------------------ VAE forward ----------------------------------

def vae_forward(params, x_nchw, eps_key):
    bs = x_nchw.shape[0]
    latent = params["mu_b"].shape[0]
    h = jnp.transpose(x_nchw, (0, 2, 3, 1)).astype(jnp.float32)    # NCHW -> NHWC

    # encoder: 4x (conv k4 s2 p1 + BN + ReLU); BN+ReLU fused into the matmul epilogue.
    # Intermediate activations stay bf16 (next consumer is a bf16 matmul anyway).
    for li in range(4):
        h = conv2d_bn_relu(h, params[f"enc{li}_w"], params[f"enc{li}_b"],
                           params[f"enc{li}_g"], params[f"enc{li}_be"],
                           out_dtype=jnp.bfloat16)

    # flatten exactly like PyTorch's NCHW reshape(bs, -1)
    h_flat = jnp.transpose(h, (0, 3, 1, 2)).reshape(bs, -1)

    # mu / logvar fused into a single projection (concat along N), sliced afterwards
    w_mulv = jnp.concatenate([params["mu_w"].T, params["lv_w"].T], axis=1)
    b_mulv = jnp.concatenate([params["mu_b"], params["lv_b"]], axis=0)
    mulv = matmul_bias(h_flat, w_mulv, b_mulv)                      # f32 (module output)
    mu, logvar = mulv[:, :latent], mulv[:, latent:]

    # reparameterization: z = mu + eps * exp(0.5*logvar)
    std = jnp.exp(0.5 * logvar)
    eps = jax.random.normal(eps_key, std.shape, std.dtype)
    z = mu + eps * std

    # decoder: linear -> (bs,1024,4,4) -> 3x (tconv + BN + ReLU) -> tconv -> tanh
    d = matmul_bias(z, params["dlin_w"].T, params["dlin_b"], out_dtype=jnp.bfloat16)
    d = d.reshape(bs, 1024, 4, 4)                  # NCHW semantics of PyTorch reshape
    d = jnp.transpose(d, (0, 2, 3, 1))             # -> NHWC
    for li in range(3):
        d = conv_transpose2d(d, params[f"dec{li}_w"], params[f"dec{li}_b"],
                             bn=(params[f"dec{li}_g"], params[f"dec{li}_be"]),
                             out_dtype=jnp.bfloat16)
    d = conv_transpose2d(d, params["dec3_w"], params["dec3_b"], activation="tanh")

    reconstructed = jnp.transpose(d, (0, 3, 1, 2))  # NHWC -> NCHW, f32
    return reconstructed, mu, logvar


# ------------------------------ self checks ----------------------------------

def _tconv_ref(x, w, b):
    """f32 reference for ConvTranspose2d(k4,s2,p1): zero-dilate + pad + flipped-kernel conv."""
    N, H, W, IC = x.shape
    OC = w.shape[1]
    xd = jnp.zeros((N, 2 * H - 1, 2 * W - 1, IC), x.dtype).at[:, ::2, ::2, :].set(x)
    xp = jnp.pad(xd, ((0, 0), (2, 2), (2, 2), (0, 0)))
    out = jnp.zeros((N, 2 * H, 2 * W, OC), jnp.float32)
    for kh in range(4):
        for kw in range(4):
            out = out + jnp.einsum("nhwc,cd->nhwd",
                                   xp[:, kh:kh + 2 * H, kw:kw + 2 * W, :],
                                   w[:, :, 3 - kh, 3 - kw],
                                   precision=jax.lax.Precision.HIGHEST)
    return out + b


def _self_test(key):
    k = jax.random.split(key, 8)
    # (1) multi-step K accumulation + bias epilogue (f32 out and bf16 out paths)
    a = jax.random.normal(k[0], (48, 4096), jnp.float32)
    b = jax.random.normal(k[1], (4096, 96), jnp.float32)
    bias = jax.random.normal(k[2], (96,), jnp.float32)
    got = matmul_bias(a, b, bias)
    ref = jnp.dot(a.astype(jnp.bfloat16), b.astype(jnp.bfloat16),
                  preferred_element_type=jnp.float32) + bias
    assert bool(jnp.allclose(got, ref, rtol=2e-2, atol=5e-2)), "matmul accumulation mismatch"
    got_bf = matmul_bias(a, b, bias, out_dtype=jnp.bfloat16).astype(jnp.float32)
    assert bool(jnp.allclose(got_bf, ref, rtol=3e-2, atol=1e-1)), "bf16-out matmul mismatch"
    # (2) fused BN+ReLU epilogue vs standalone BN kernel
    a = jax.random.normal(k[3], (96, 256), jnp.float32)
    b = jax.random.normal(k[4], (256, 128), jnp.float32)
    bias = jax.random.normal(k[5], (128,), jnp.float32)
    gamma = jax.random.normal(k[6], (128,), jnp.float32)
    beta = jax.random.normal(k[7], (128,), jnp.float32)
    fused = matmul_bias(a, b, bias, bn=(gamma, beta))
    unfused = batchnorm_relu(matmul_bias(a, b, bias), gamma, beta)
    assert bool(jnp.allclose(fused, unfused, rtol=1e-2, atol=1e-2)), "fused BN mismatch"
    # (3) sub-pixel ConvTranspose2d vs dilated-conv reference (bf16-rounded inputs)
    kx, kw_, kb = jax.random.split(k[0], 3)
    x = jax.random.normal(kx, (1, 3, 3, 8), jnp.float32)
    w = jax.random.normal(kw_, (8, 4, 4, 4), jnp.float32)
    bb = jax.random.normal(kb, (4,), jnp.float32)
    got = conv_transpose2d(x, w, bb)
    ref = _tconv_ref(x.astype(jnp.bfloat16).astype(jnp.float32),
                     w.astype(jnp.bfloat16).astype(jnp.float32), bb)
    assert bool(jnp.allclose(got, ref, rtol=1e-2, atol=2e-2)), "conv_transpose mismatch"


# --------------------------------- main ---------------------------------------

if __name__ == "__main__":
    # The module hardcodes a 1024*4*4 bottleneck, so the spatial size must be 64x64.
    in_channels, latent_dims, batch = 3, 32, 2

    root = jax.random.PRNGKey(0)
    k_params, k_input, k_eps, k_test = jax.random.split(root, 4)

    _self_test(k_test)

    params = init_params(k_params, in_channels, latent_dims)
    x = jax.random.normal(k_input, (batch, in_channels, 64, 64), jnp.float32)

    fwd = jax.jit(vae_forward)
    recon, mu, logvar = fwd(params, x, k_eps)
    jax.block_until_ready((recon, mu, logvar))

    assert recon.shape == (batch, in_channels, 64, 64)
    assert mu.shape == (batch, latent_dims) and logvar.shape == (batch, latent_dims)
    assert bool(jnp.all(jnp.isfinite(recon)))
    print("KERNEL_OK")
</pallas_src>

<mosaic_0001>
module attributes {stable_mosaic.version = 11 : i64} {
  func.func @_matmul_kernel(%arg0: i32, %arg1: i32, %arg2: i32, %arg3: i32, %arg4: memref<1x16x2048xbf16, #tpu.memory_space<vmem>>, %arg5: memref<1x2048x128xbf16, #tpu.memory_space<vmem>>, %arg6: memref<1x1x128xf32, #tpu.memory_space<vmem>>, %arg7: memref<1x16x128xf32, #tpu.memory_space<vmem>>, %arg8: memref<16x128xf32, #tpu.memory_space<vmem>>) attributes {dimension_semantics = [#tpu.dimension_semantics<parallel>, #tpu.dimension_semantics<parallel>, #tpu.dimension_semantics<parallel>, #tpu.dimension_semantics<arbitrary>], iteration_bounds = array<i64: 1, 3, 1, 2>, scalar_prefetch = 0 : i64, scratch_operands = 1 : i64, tpu.core_type = #tpu.core_type<tc>, window_params = [{transform_indices = @transform_0, window_bounds = array<i64: 1, 16, 2048>}, {transform_indices = @transform_1, window_bounds = array<i64: 1, 2048, 128>}, {transform_indices = @transform_2, window_bounds = array<i64: 1, 1, 128>}, {transform_indices = @transform_3, window_bounds = array<i64: 1, 16, 128>}]} {
    %c0 = arith.constant 0 : index
    %c0_0 = arith.constant 0 : index
    %c0_1 = arith.constant 0 : index
    %0 = vector.load %arg4[%c0, %c0_0, %c0_1] : memref<1x16x2048xbf16, #tpu.memory_space<vmem>>, vector<1x16x2048xbf16>
    %1 = vector.shape_cast %0 : vector<1x16x2048xbf16> to vector<16x2048xbf16>
    %c0_2 = arith.constant 0 : index
    %c0_3 = arith.constant 0 : index
    %c0_4 = arith.constant 0 : index
    %2 = vector.load %arg5[%c0_2, %c0_3, %c0_4] : memref<1x2048x128xbf16, #tpu.memory_space<vmem>>, vector<1x2048x128xbf16>
    %3 = vector.shape_cast %2 : vector<1x2048x128xbf16> to vector<2048x128xbf16>
    %cst = arith.constant dense<0.000000e+00> : vector<16x128xf32>
    %4 = tpu.matmul %1, %3, %cst {dimension_numbers = #tpu.dot_dimension_numbers<[1], [0], [0], [1], [0, 0, 1, 1], [], []>} : vector<16x2048xbf16>, vector<2048x128xbf16>, vector<16x128xf32> -> vector<16x128xf32>
    %c0_i32 = arith.constant 0 : i32
    %5 = arith.cmpi eq, %arg3, %c0_i32 : i32
    %6 = arith.extui %5 : i1 to i32
    %c0_i32_5 = arith.constant 0 : i32
    %7 = arith.cmpi ne, %6, %c0_i32_5 : i32
    scf.if %7 {
      %c0_9 = arith.constant 0 : index
      %c0_10 = arith.constant 0 : index
      %14 = vector.load %arg8[%c0_9, %c0_10] : memref<16x128xf32, #tpu.memory_space<vmem>>, vector<16x128xf32>
      tpu.vector_store %arg8[%c0_9, %c0_10], %4 {strides = array<i32>} : memref<16x128xf32, #tpu.memory_space<vmem>>, vector<16x128xf32>,
    } else {
    }
    %c0_i32_6 = arith.constant 0 : i32
    %8 = arith.cmpi sgt, %arg3, %c0_i32_6 : i32
    %9 = arith.extui %8 : i1 to i32
    %c0_i32_7 = arith.constant 0 : i32
    %10 = arith.cmpi ne, %9, %c0_i32_7 : i32
    scf.if %10 {
      %c0_9 = arith.constant 0 : index
      %c0_10 = arith.constant 0 : index
      %14 = vector.load %arg8[%c0_9, %c0_10] : memref<16x128xf32, #tpu.memory_space<vmem>>, vector<16x128xf32>
      %15 = arith.addf %14, %4 : vector<16x128xf32>
      %c0_11 = arith.constant 0 : index
      %c0_12 = arith.constant 0 : index
      %16 = vector.load %arg8[%c0_11, %c0_12] : memref<16x128xf32, #tpu.memory_space<vmem>>, vector<16x128xf32>
      tpu.vector_store %arg8[%c0_11, %c0_12], %15 {strides = array<i32>} : memref<16x128xf32, #tpu.memory_space<vmem>>, vector<16x128xf32>,
    } else {
    }
    %c1_i32 = arith.constant 1 : i32
    %11 = arith.cmpi eq, %arg3, %c1_i32 : i32
    %12 = arith.extui %11 : i1 to i32
    %c0_i32_8 = arith.constant 0 : i32
    %13 = arith.cmpi ne, %12, %c0_i32_8 : i32
    scf.if %13 {
      %c0_9 = arith.constant 0 : index
      %c0_10 = arith.constant 0 : index
      %14 = vector.load %arg8[%c0_9, %c0_10] : memref<16x128xf32, #tpu.memory_space<vmem>>, vector<16x128xf32>
      %c0_11 = arith.constant 0 : index
      %c0_12 = arith.constant 0 : index
      %c0_13 = arith.constant 0 : index
      %15 = vector.load %arg6[%c0_11, %c0_12, %c0_13] : memref<1x1x128xf32, #tpu.memory_space<vmem>>, vector<1x1x128xf32>
      %16 = vector.shape_cast %15 : vector<1x1x128xf32> to vector<1x128xf32>
      %17 = vector.broadcast %16 : vector<1x128xf32> to vector<16x128xf32>
      %18 = arith.addf %14, %17 : vector<16x128xf32>
      %c0_14 = arith.constant 0 : index
      %c0_15 = arith.constant 0 : index
      %c0_16 = arith.constant 0 : index
      %19 = vector.load %arg7[%c0_14, %c0_15, %c0_16] : memref<1x16x128xf32, #tpu.memory_space<vmem>>, vector<1x16x128xf32>
      %20 = vector.shape_cast %19 : vector<1x16x128xf32> to vector<16x128xf32>
      %21 = vector.shape_cast %18 : vector<16x128xf32> to vector<1x16x128xf32>
      tpu.vector_store %arg7[%c0_14, %c0_15, %c0_16], %21 {strides = array<i32>} : memref<1x16x128xf32, #tpu.memory_space<vmem>>, vector<1x16x128xf32>,
    } else {
    }
    return
  }
  func.func @transform_0(%arg0: i32, %arg1: i32, %arg2: i32, %arg3: i32) -> (i32, i32, i32) {
    %c0_i32 = arith.constant 0 : i32
    return %arg0, %arg1, %arg3 : i32, i32, i32
  }
  func.func @transform_1(%arg0: i32, %arg1: i32, %arg2: i32, %arg3: i32) -> (i32, i32, i32) {
    %c0_i32 = arith.constant 0 : i32
    return %arg0, %arg3, %arg2 : i32, i32, i32
  }
  func.func @transform_2(%arg0: i32, %arg1: i32, %arg2: i32, %arg3: i32) -> (i32, i32, i32) {
    %c0_i32 = arith.constant 0 : i32
    %c0_i32_0 = arith.constant 0 : i32
    return %arg0, %c0_i32, %arg2 : i32, i32, i32
  }
  func.func @transform_3(%arg0: i32, %arg1: i32, %arg2: i32, %arg3: i32) -> (i32, i32, i32) {
    %c0_i32 = arith.constant 0 : i32
    return %arg0, %arg1, %arg2 : i32, i32, i32
  }
}

</mosaic_0001>

<bundles_post_ra>
// kernel: tpu_custom_call.1
= control target key start
LH: loop header
LB: loop body
LE: loop exit
PB: predicated region body
PF: predicated region fallthrough
CT: control target
= control target key end

     0   :  { %s3240_s0 = inlined_call_operand.hbm [shape: bf16[1,48,4096], index: 0, kind: input, shape index: {}]   ;;  %s3241_s1 = inlined_call_operand.hbm [shape: bf16[1,4096,128], index: 1, kind: input, shape index: {}]   ;;  %s3242_s2 = inlined_call_operand.vmem [shape: f32[1,1,128], index: 2, kind: input, shape index: {}]   ;;  %s3243_s3 = inlined_call_operand.hbm [shape: f32[1,48,128], index: 3, kind: output, shape index: {}]  }
   0x1   :  { %3250 = sst [smem:[#allocation17_spill]] %s3240_s0 }
   0x2   :  { %3251 = sst [smem:[#allocation18_spill]] %s3242_s2 }
   0x3   :  { %3252 = sst [smem:[#allocation19_spill]] %s3243_s3 }
   0x4   :  { %8 = vsyncpa [#allocation4], 0 }
   0x5   :  { %10 = vsyncpa [#allocation4 + $0x1], 0 }
   0x6   :  { %11 = vsyncpa [#allocation7], 0 }
   0x7   :  { %13 = vsyncpa [#allocation7 + $0x1], 0 }
   0x8   :  { %14 = vsyncpa [#allocation5], 0 }
   0x9   :  { %16 = vsyncpa [#allocation5 + $0x1], 0  ;;  %s2793_s12 = smov 0   ;;  %s2795_s13 = smov 0  }
   0xa   :  { %s2797_s14 = smov 0   ;;  %s2799_s15 = smov 0  }
   0xb   :  { %s2801_s16 = smov 0   ;;  %s2803_s17 = smov 0  }
   0xc   :  { %s2805_s18 = smov 0   ;;  %s2807_s19 = smov 0  }
   0xd   :  { %s2809_s20 = smov 0   ;;  %s2811_s21 = smov 0  }
   0xe   :  { %s2813_s22 = smov 0   ;;  %s2815_s23 = smov 0  }
   0xf   :  { %s2817_s24 = smov 0   ;;  %s2819_s25 = smov 0  }
  0x10 LB: > { %3253 = sst [smem:[#allocation12_spill]] %s2746_s21  ;;  %s37_s26 = sadd.s32 1, %s2754_s23  ;;  %s2762_s25 = sphi %s2819_s25, %s22_s25   ;;  %s2758_s24 = sphi %s2817_s24, %s3280_s24   ;;  %s2754_s23 = sphi %s2815_s23, %s3292_s23   ;;  %s2750_s22 = sphi %s2813_s22, %s3291_s22   ;;  %s2746_s21 = sphi %s2811_s21, %s3290_s21   ;;  %s2742_s20 = sphi %s2809_s20, %s3289_s20   ;;  %s2738_s19 = sphi %s2807_s19, %s3288_s19   ;;  %s2734_s18 = sphi %s2805_s18, %s3287_s18   ;;  %s2730_s17 = sphi %s2803_s17, %s3286_s17   ;;  %s2726_s16 = sphi %s2801_s16, %s3285_s16   ;;  %s2722_s15 = sphi %s2799_s15, %s3284_s15   ;;  %s2718_s14 = sphi %s2797_s14, %s3283_s14   ;;  %s2714_s13 = sphi %s2795_s13, %s3282_s13   ;;  %s2710_s12 = sphi %s2793_s12, %s3281_s12  }
  0x11   : > { %3254 = sst [smem:[#allocation13_spill]] %s2750_s22  ;;  %s44_s27 = sadd.s32 1, %s2758_s24 }
  0x12   : > { %3255 = sst [smem:[#allocation14_spill]] %s2758_s24  ;;  %p38_p0 = scmp.ge.s32.totalorder %s37_s26, 2 }
  0x13   : > { %s59_s28 = sadd.s32 1, %s2742_s20  ;;  %p66_p1 = scmp.ne.s32.totalorder %s2742_s20, %s2738_s19 }
  0x14   : > { %p67_p2 = scmp.eq.s32.totalorder %s2762_s25, 0  ;;  %s3294_s26 = smov (%p38_p0, %s37_s26), 0 }
  0x15   : > { %3256 = sst [smem:[#allocation15_spill]] %s3294_s26  ;;  %s3296_s27 = smov (!%p38_p0, %s44_s27), %s2758_s24 }
  0x16   : > { %s2874_s29 = ssub.s32 %s2754_s23, %s3294_s26  ;;  %p2878_p3 = por %p67_p2, %p66_p1 }
  0x17   : > { %p46_p4 = scmp.ge.s32.totalorder %s3296_s27, 3  ;;  %p72_p5 = scmp.ne.s32.totalorder %s2738_s19, %s2734_s18 }
  0x18   : > { %s147_s4 = sadd.s32 1, %s2718_s14  ;;  %p3247_p6 = scmp.lt.s32.totalorder %s2762_s25, 6 }
  0x19   : > { %s3298_s27 = smov (%p46_p4, %s3296_s27), 0  ;;  %s193_s5 = sand.u32 1, %s2742_s20  }
  0x1a   : > { %3258 = sst [smem:[#allocation16_spill]] %s3298_s27  ;;  %s53_s6 = ssub.s32 %s2758_s24, %s3298_s27 }
  0x1b   : > { %s56_s7 = sor.u32 %s2874_s29, %s53_s6  ;;  %p145_p7 = scmp.eq.s32.totalorder %s53_s6, 0 }
  0x1c   : > { %p57_p8 = scmp.eq.s32.totalorder %s56_s7, 0  ;;  %s1949_s8 = sshll.u32 %s193_s5, 7 }
  0x1d   : > { %s2893_s9 = scalar_select %p145_p7, %s2718_s14, %s147_s4  }
  0x1e   : > { %s2896_s10 = scalar_select %p57_p8, %s2742_s20, %s59_s28  }
  0x1f   : > { %s1951_s11 = sshll.u32 %s2754_s23, 4  ;;  %s2114_s26 = sshll.u32 %s2758_s24, 6 }
  0x20   : > { %s197_s3 = scalar_lea.vmem [#allocation3], %s1949_s8  ;;  %s204_s2 = sadd.s32 %s2114_s26, %s1951_s11 }
  0x21   : > { %s209_s22 = sshll.u32 %s197_s3, 4  ;;  %s1953_s21 = sshll.u32 %s204_s2, 6  ;;  %s210_s22 = int_to_ptr.vmem [resolvable:$true] %s209_s22 }
  0x22   : > { %p2904_p9 = pnand %p3247_p6, %p2878_p3  ;;  %s3260_s0 = sld [smem:[#allocation17_spill]] }
  0x23   : > { %p1957_p10 = scmp.ge.s32.totalorder %s2762_s25, 1  ;;  %s194_s28 = scalar_lea.sflag [#allocation4], %s193_s5 }
  0x24   : > { %p2560_p11 = pneg %p2904_p9  ;;  %s2571_s8 = scalar_lea.vmem %s210_s22, 2048 }
  0x25   : > { %p2572_p12 = scmp.ne.s32.totalorder %s210_s22, %s2571_s8  ;;  %s2764_s2 = smov [#allocation3]  }
  0x26   : > { %s2576_s3 = sshll.u32 %s2764_s2, 4  ;;  %s2577_s3 = int_to_ptr.vmem [resolvable:$false] %s2576_s3 }
  0x27   : > { %p2574_p13 = pnand %p2572_p12, %p2560_p11  ;;  %s2578_s26 = scalar_lea.vmem %s2577_s3, 4096 }
  0x28   : > { %s208_s4 = scalar_lea.hbm %s3260_s0, %s1953_s21  ;;  %p2579_p1 = scmp.lt.s32.totalorder %s210_s22, %s2577_s3 }
  0x29   : > { %p2575_p0 = pneg %p2574_p13  ;;  %p2580_p3 = scmp.lt.s32.totalorder %s2578_s26, %s2571_s8 }
  0x2b   : > { %p2581_p4 = por %p2580_p3, %p2579_p1 }
  0x2d   : > { %p2582_p7 = pnand %p2581_p4, %p2575_p0 }
  0x2f   : > { %2585 = shalt.err (!%p2582_p7)
}
  0x30   : > { %s2765_s30 = smov 2048   ;;  %s2766_s21 = smov 1024  }
  0x31   : > { %s3248_s5 = smov 64   ;;  %p241_p8 = scmp.lt.s32.totalorder %s2762_s25, 7 }
  0x32   : > { %2302 = dma.hbm_to_vmem [thread:$0]  (!%p2904_p9), %s208_s4, 2048, %s210_s22, %s194_s28, %s2765_s30, %s2766_s21, %s3248_s5  }
  0x33   : > { %p2920_p11 = pnand %p1957_p10, %p241_p8  ;;  %s1944_s6 = sadd.s32 4294967295, %s2762_s25  }
  0x34   : > { %s1945_s7 = sadd.s32 4294967294, %s2762_s25   ;;  %p73_p12 = scmp.eq.s32.totalorder %s1944_s6, 0 }
  0x35   : > { %p87_p13 = scmp.eq.s32.totalorder %s2874_s29, 0  ;;  %s89_s8 = sadd.s32 1, %s2730_s17 }
  0x36   : > { %p96_p0 = scmp.ne.s32.totalorder %s2730_s17, %s2726_s16  ;;  %p2933_p1 = por %p73_p12, %p72_p5 }
  0x37   : > { %p102_p9 = scmp.ne.s32.totalorder %s2726_s16, %s2722_s15  ;;  %p157_p4 = scmp.ne.s32.totalorder %s2718_s14, %s2714_s13 }
  0x38   : > { %s2940_s22 = scalar_select %p87_p13, %s2730_s17, %s89_s8  }
  0x39   : > { %p2944_p10 = por %p96_p0, %p67_p2  ;;  %p2948_p3 = por %p102_p9, %p73_p12 }
  0x3a   : > { %p158_p7 = scmp.eq.s32.totalorder %s1944_s6, 5  ;;  %p163_p5 = scmp.ne.s32.totalorder %s2714_s13, %s2710_s12 }
  0x3b   : > { %p164_p8 = scmp.eq.s32.totalorder %s1945_s7, 5  ;;  %s219_s15 = sand.u32 1, %s2730_s17  }
  0x3c   : > { %p2956_p6 = por %p158_p7, %p157_p4  ;;  %s1954_s2 = sshll.u32 %s219_s15, 10 }
  0x3d   : > { %p2961_p13 = por %p164_p8, %p163_p5  ;;  %s2115_s3 = sshll.u32 %s2754_s23, 14 }
  0x3e   : > { %s232_s21 = scalar_lea.hbm %s3241_s1, %s2115_s3  ;;  %s223_s8 = scalar_lea.vmem [#allocation6], %s1954_s2 }
  0x3f   : > { %s3266_s28 = scalar_select %p2961_p13, 1, 0 }
  0x40   : > { %s233_s5 = sshll.u32 %s223_s8, 4  ;;  %p3267_p2 = scmp.lt.s32.totalorder %s2762_s25, 6  ;;  %s234_s5 = int_to_ptr.vmem [resolvable:$true] %s233_s5 }
  0x41   : > { %s220_s7 = scalar_lea.sflag [#allocation7], %s219_s15  ;;  %s2599_s0 = scalar_lea.vmem %s234_s5, 16384 }
  0x42   : > { %p2973_p12 = pnand %p3267_p2, %p2944_p10  ;;  %p2600_p9 = scmp.ne.s32.totalorder %s234_s5, %s2599_s0 }
  0x43   : > { %s2768_s24 = smov [#allocation6]  }
  0x44   : > { %p2588_p0 = pneg %p2973_p12  ;;  %s2604_s26 = sshll.u32 %s2768_s24, 4  ;;  %s2605_s26 = int_to_ptr.vmem [resolvable:$false] %s2604_s26 }
  0x45   : > { %s2606_s2 = scalar_lea.vmem %s2605_s26, 32768  ;;  %p2607_p5 = scmp.lt.s32.totalorder %s234_s5, %s2605_s26 }
  0x46   : > { %p2602_p4 = pnand %p2600_p9, %p2588_p0  ;;  %p2608_p8 = scmp.lt.s32.totalorder %s2606_s2, %s2599_s0 }
  0x48   : > { %p2603_p7 = pneg %p2602_p4  ;;  %p2609_p13 = por %p2608_p8, %p2607_p5 }
  0x4a   : > { %p2610_p10 = pnand %p2609_p13, %p2603_p7 }
  0x4c   : > { %2613 = shalt.err (!%p2610_p10)
}
  0x4d   : > { %s2769_s4 = smov 4   ;;  %s3269_s3 = smov 64  }
  0x4e   : > { %2305 = dma.hbm_to_vmem [thread:$0]  (!%p2973_p12), %s232_s21, 16384, %s234_s5, %s220_s7, %s3269_s3, %s3269_s3, %s2769_s4  }
  0x4f   : > { %245 = sbr.rel (%p2920_p11) target bundleno = 485 (0x1e5), region = 32  ;;  %s247_s15 = sand.u32 (!%p2920_p11), 1, %s2738_s19  }
  0x50   : > { %s1958_s24 = sshll.u32 (!%p2920_p11), %s247_s15, 7  ;;  %s248_s30 = scalar_lea.sflag (!%p2920_p11), [#allocation4], %s247_s15 }
  0x51   : > { %s2986_s8 = scalar_lea.vmem (!%p2920_p11), [#allocation3], %s1958_s24 }
  0x54   : > { %2697 = dma.done.wait (%p2933_p1), %s248_s30, 2048  }
  0x55   : > { %2699 = vsyncadd (%p2933_p1), %s248_s30, 4294965248  ;;  %s256_s0 = sand.u32 1, %s2726_s16  }
  0x56   : > { %s1959_s6 = sshll.u32 %s256_s0, 10  ;;  %s257_s5 = scalar_lea.sflag [#allocation7], %s256_s0 }
  0x57   : > { %s2993_s21 = scalar_lea.vmem [#allocation6], %s1959_s6 }
  0x58   : > { %2701 = dma.done.wait (%p2948_p3), %s257_s5, 16384  }
  0x59   : > { %2703 = vsyncadd (%p2948_p3), %s257_s5, 4294950912  ;;  %s291_s11 = sand.u32 1, %s2714_s13   ;;  %v2430_v0 = vld [vmem:[%s2993_s21 + $0x78] sm:$0xff]   ;;  %v2434_v4 = vld [vmem:[%s2993_s21 + $0x70] sm:$0xff]   ;;  %s3270_s7 = sld [smem:[#allocation12_spill]] }
  0x5a   : > { %s3002_s27 = sshll.u32 %s291_s11, 4  ;;  %v2431_v1 = vld [vmem:[%s2993_s21 + $0xf8] sm:$0xff]   ;;  %2117 = vmatprep.subr.bf16.mxu0 %v2430_v0  ;;  %v2435_v5 = vld [vmem:[%s2993_s21 + $0xf0] sm:$0xff]   ;;  %v2438_v8 = vld [vmem:[%s2993_s21 + $0x68] sm:$0xff]  }
  0x5b   : > { %v2432_v2 = vld [vmem:[%s2993_s21 + $0x38] sm:$0xff]   ;;  %2139 = vmatprep.subr.bf16.mxu1 %v2431_v1  ;;  %v2436_v6 = vld [vmem:[%s2993_s21 + $0x30] sm:$0xff]   ;;  %v2439_v9 = vld [vmem:[%s2993_s21 + $0xe8] sm:$0xff]   ;;  %s293_s29 = scalar_lea.vmem [#allocation8], %s3002_s27 }
  0x5c   : > { %v2433_v3 = vld [vmem:[%s2993_s21 + $0xb8] sm:$0xff]   ;;  %2118 = vmatpush3.bf16.msra.mxu0 %v2432_v2  ;;  %v2437_v7 = vld [vmem:[%s2993_s21 + $0xb0] sm:$0xff]   ;;  %v2440_v10 = vld [vmem:[%s2993_s21 + $0x28] sm:$0xff]  }
  0x5d   : > { %2140 = vmatpush3.bf16.msra.mxu1 %v2433_v3  ;;  %2119 = vmatprep.subr.bf16.mxu0 %v2434_v4  ;;  %v2441_v11 = vld [vmem:[%s2993_s21 + $0xa8] sm:$0xff]   ;;  %v2442_v12 = vld [vmem:[%s2993_s21 + $0x60] sm:$0xff]   ;;  %v2446_v16 = vld [vmem:[%s2993_s21 + $0x58] sm:$0xff]  }
  0x5e   : > { %2141 = vmatprep.subr.bf16.mxu1 %v2435_v5  ;;  %v2443_v13 = vld [vmem:[%s2993_s21 + $0xe0] sm:$0xff]   ;;  %v2447_v17 = vld [vmem:[%s2993_s21 + $0xd8] sm:$0xff]   ;;  %v2450_v20 = vld [vmem:[%s2993_s21 + $0x50] sm:$0xff]  }
  0x5f   : > { %v2444_v14 = vld [vmem:[%s2993_s21 + $0x20] sm:$0xff]   ;;  %v2448_v18 = vld [vmem:[%s2993_s21 + $0x18] sm:$0xff]   ;;  %v2451_v21 = vld [vmem:[%s2993_s21 + $0xd0] sm:$0xff]   ;;  %p2105_p11 = scmp.ne.s32.totalorder %s3270_s7, 0 }
  0x60   : > { %2120 = vmatpush3.bf16.msra.mxu0 %v2436_v6  ;;  %v2445_v15 = vld [vmem:[%s2993_s21 + $0xa0] sm:$0xff]   ;;  %v2449_v19 = vld [vmem:[%s2993_s21 + $0x98] sm:$0xff]   ;;  %v2452_v22 = vld [vmem:[%s2993_s21 + $0x10] sm:$0xff]  }
  0x61   : > { %2142 = vmatpush3.bf16.msra.mxu1 %v2437_v7  ;;  %2121 = vmatprep.subr.bf16.mxu0 %v2438_v8  ;;  %v2453_v23 = vld [vmem:[%s2993_s21 + $0x90] sm:$0xff]   ;;  %v2454_v24 = vld [vmem:[%s2993_s21 + $0x48] sm:$0xff]   ;;  %v2458_v28 = vld [vmem:[%s2993_s21 + $0x40] sm:$0xff]  }
  0x62   : > { %2143 = vmatprep.subr.bf16.mxu1 %v2439_v9  ;;  %v2455_v25 = vld [vmem:[%s2993_s21 + $0xc8] sm:$0xff]   ;;  %v2459_v29 = vld [vmem:[%s2993_s21 + $0xc0] sm:$0xff]   ;;  %v2462_v40 = vld [vmem:[%s2993_s21 + $0x178] sm:$0xff]  }
  0x63   : > { %v2456_v26 = vld [vmem:[%s2993_s21 + $0x8] sm:$0xff]   ;;  %v2460_v30 = vld [vmem:[%s2993_s21] sm:$0xff]   ;;  %v2463_v41 = vld [vmem:[%s2993_s21 + $0x1f8] sm:$0xff]  }
  0x64   : > { %2122 = vmatpush3.bf16.msra.mxu0 %v2440_v10  ;;  %v2457_v27 = vld [vmem:[%s2993_s21 + $0x88] sm:$0xff]   ;;  %v2461_v31 = vld [vmem:[%s2993_s21 + $0x80] sm:$0xff]   ;;  %v2464_v42 = vld [vmem:[%s2993_s21 + $0x138] sm:$0xff]  }
  0x65   : > { %2144 = vmatpush3.bf16.msra.mxu1 %v2441_v11  ;;  %2123 = vmatprep.subr.bf16.mxu0 %v2442_v12  ;;  %v305_v32 = vld [vmem:[%s2986_s8] sm:$0xff]  ;;  %v306_v34 = vld [vmem:[%s2986_s8 + $0x8] sm:$0xff]  ;;  %v2465_v43 = vld [vmem:[%s2993_s21 + $0x1b8] sm:$0xff]  }
  0x66   : > { %2145 = vmatprep.subr.bf16.mxu1 %v2443_v13  ;;  %v313_v33 = vld [vmem:[%s2986_s8 + $0x40] sm:$0xff]  ;;  %v314_v37 = vld [vmem:[%s2986_s8 + $0x48] sm:$0xff]  ;;  %v2466_v44 = vld [vmem:[%s2993_s21 + $0x170] sm:$0xff]  }
  0x67   : > { %v1961_v35 = vcombine.low %v305_v32, %v313_v33  ;;  %v1962_v36 = vcombine.high %v305_v32, %v313_v33  ;;  %v1963_v38 = vcombine.low %v306_v34, %v314_v37  ;;  %v1964_v39 = vcombine.high %v306_v34, %v314_v37  ;;  %v2467_v45 = vld [vmem:[%s2993_s21 + $0x1f0] sm:$0xff]   ;;  %v2470_v48 = vld [vmem:[%s2993_s21 + $0x168] sm:$0xff]   ;;  %v2474_v52 = vld [vmem:[%s2993_s21 + $0x160] sm:$0xff]  }
  0x68   : > { %2124 = vmatpush3.bf16.msra.mxu0 %v2444_v14  ;;  %v2468_v46 = vld [vmem:[%s2993_s21 + $0x130] sm:$0xff]   ;;  %v2471_v49 = vld [vmem:[%s2993_s21 + $0x1e8] sm:$0xff]   ;;  %v2475_v53 = vld [vmem:[%s2993_s21 + $0x1e0] sm:$0xff]  }
  0x69   : > { %2146 = vmatpush3.bf16.msra.mxu1 %v2445_v15  ;;  %2125 = vmatprep.subr.bf16.mxu0 %v2446_v16  ;;  %v2469_v47 = vld [vmem:[%s2993_s21 + $0x1b0] sm:$0xff]   ;;  %v2472_v50 = vld [vmem:[%s2993_s21 + $0x128] sm:$0xff]   ;;  %v2476_v54 = vld [vmem:[%s2993_s21 + $0x120] sm:$0xff]  }
  0x6a   : > { %2147 = vmatprep.subr.bf16.mxu1 %v2447_v17  ;;  %1457 = vmatprep.mubr.bf16.mxu0 %v1962_v36  ;;  %v2473_v51 = vld [vmem:[%s2993_s21 + $0x1a8] sm:$0xff]   ;;  %v2477_v55 = vld [vmem:[%s2993_s21 + $0x1a0] sm:$0xff]   ;;  %v2478_v56 = vld [vmem:[%s2993_s21 + $0x158] sm:$0xff]  }
  0x6b   : > { %1498 = vmatprep.mubr.bf16.mxu1 %v1964_v39  ;;  %v2479_v57 = vld [vmem:[%s2993_s21 + $0x1d8] sm:$0xff]   ;;  %v2482_v60 = vld [vmem:[%s2993_s21 + $0x150] sm:$0xff]   ;;  %v2486_v0 = vld [vmem:[%s2993_s21 + $0x148] sm:$0xff]  }
  0x6c   : > { %2126 = vmatpush3.bf16.msra.mxu0 %v2448_v18  ;;  %v2480_v58 = vld [vmem:[%s2993_s21 + $0x118] sm:$0xff]   ;;  %v2483_v61 = vld [vmem:[%s2993_s21 + $0x1d0] sm:$0xff]   ;;  %v2487_v1 = vld [vmem:[%s2993_s21 + $0x1c8] sm:$0xff]  }
  0x6d   : > { %2148 = vmatpush3.bf16.msra.mxu1 %v2449_v19  ;;  %2127 = vmatprep.subr.bf16.mxu0 %v2450_v20  ;;  %v2481_v59 = vld [vmem:[%s2993_s21 + $0x198] sm:$0xff]   ;;  %v2484_v62 = vld [vmem:[%s2993_s21 + $0x110] sm:$0xff]   ;;  %v2488_v2 = vld [vmem:[%s2993_s21 + $0x108] sm:$0xff]  }
  0x6e   : > { %2149 = vmatprep.subr.bf16.mxu1 %v2451_v21  ;;  %v2485_v63 = vld [vmem:[%s2993_s21 + $0x190] sm:$0xff]   ;;  %v2489_v3 = vld [vmem:[%s2993_s21 + $0x188] sm:$0xff]   ;;  %v2490_v4 = vld [vmem:[%s2993_s21 + $0x140] sm:$0xff]  }
  0x6f   : > { %v2491_v5 = vld [vmem:[%s2993_s21 + $0x1c0] sm:$0xff]   ;;  %v307_v8 = vld [vmem:[%s2986_s8 + $0x10] sm:$0xff]  ;;  %v308_v12 = vld [vmem:[%s2986_s8 + $0x18] sm:$0xff] }
  0x70   : > { %2128 = vmatpush3.bf16.msra.mxu0 %v2452_v22  ;;  %v2492_v6 = vld [vmem:[%s2993_s21 + $0x100] sm:$0xff]   ;;  %v315_v9 = vld [vmem:[%s2986_s8 + $0x50] sm:$0xff]  ;;  %v316_v13 = vld [vmem:[%s2986_s8 + $0x58] sm:$0xff] }
  0x71   : > { %2150 = vmatpush3.bf16.msra.mxu1 %v2453_v23  ;;  %2129 = vmatprep.subr.bf16.mxu0 %v2454_v24  ;;  %v2493_v7 = vld [vmem:[%s2993_s21 + $0x180] sm:$0xff]   ;;  %v1965_v10 = vcombine.low %v307_v8, %v315_v9  ;;  %v1966_v11 = vcombine.high %v307_v8, %v315_v9  ;;  %v1967_v14 = vcombine.low %v308_v12, %v316_v13  ;;  %v2494_v16 = vld [vmem:[%s2993_s21 + $0x278] sm:$0xff]   ;;  %v2498_v20 = vld [vmem:[%s2993_s21 + $0x270] sm:$0xff]  }
  0x72   : > { %2151 = vmatprep.subr.bf16.mxu1 %v2455_v25  ;;  %v1968_v15 = vcombine.high %v308_v12, %v316_v13  ;;  %v2495_v17 = vld [vmem:[%s2993_s21 + $0x2f8] sm:$0xff]   ;;  %v2499_v21 = vld [vmem:[%s2993_s21 + $0x2f0] sm:$0xff]   ;;  %v2502_v24 = vld [vmem:[%s2993_s21 + $0x268] sm:$0xff]  }
  0x73   : > { %v2496_v18 = vld [vmem:[%s2993_s21 + $0x238] sm:$0xff]   ;;  %v2500_v22 = vld [vmem:[%s2993_s21 + $0x230] sm:$0xff]   ;;  %v2503_v25 = vld [vmem:[%s2993_s21 + $0x2e8] sm:$0xff]  }
  0x74   : > { %2130 = vmatpush3.bf16.msra.mxu0 %v2456_v26  ;;  %v2497_v19 = vld [vmem:[%s2993_s21 + $0x2b8] sm:$0xff]   ;;  %v2501_v23 = vld [vmem:[%s2993_s21 + $0x2b0] sm:$0xff]   ;;  %v2504_v26 = vld [vmem:[%s2993_s21 + $0x228] sm:$0xff]  }
  0x75   : > { %2152 = vmatpush3.bf16.msra.mxu1 %v2457_v27  ;;  %2131 = vmatprep.subr.bf16.mxu0 %v2458_v28  ;;  %v2505_v27 = vld [vmem:[%s2993_s21 + $0x2a8] sm:$0xff]   ;;  %v2506_v28 = vld [vmem:[%s2993_s21 + $0x260] sm:$0xff]   ;;  %v2510_v32 = vld [vmem:[%s2993_s21 + $0x258] sm:$0xff]  }
  0x76   : > { %2153 = vmatprep.subr.bf16.mxu1 %v2459_v29  ;;  %v2507_v29 = vld [vmem:[%s2993_s21 + $0x2e0] sm:$0xff]   ;;  %v2511_v33 = vld [vmem:[%s2993_s21 + $0x2d8] sm:$0xff]   ;;  %v2514_v36 = vld [vmem:[%s2993_s21 + $0x250] sm:$0xff]  }
  0x77   : > { %v2512_v34 = vld [vmem:[%s2993_s21 + $0x218] sm:$0xff]   ;;  %v2515_v37 = vld [vmem:[%s2993_s21 + $0x2d0] sm:$0xff]  }
  0x78   : > { %2132 = vmatpush3.bf16.msra.mxu0 %v2460_v30  ;;  %v2508_v30 = vld [vmem:[%s2993_s21 + $0x220] sm:$0xff]   ;;  %v2517_v39 = vld [vmem:[%s2993_s21 + $0x290] sm:$0xff]   ;;  %v2542_v8 = vld [vmem:[%s2993_s21 + $0x358] sm:$0xff]  }
  0x79   : > { %2154 = vmatpush3.bf16.msra.mxu1 %v2461_v31  ;;  %2161 = vmatprep.subr.bf16.mxu0 %v2462_v40  ;;  %v2509_v31 = vld [vmem:[%s2993_s21 + $0x2a0] sm:$0xff]   ;;  %v2518_v40 = vld [vmem:[%s2993_s21 + $0x248] sm:$0xff]   ;;  %v2543_v9 = vld [vmem:[%s2993_s21 + $0x3d8] sm:$0xff]  }
  0x7a   : > { %2183 = vmatprep.subr.bf16.mxu1 %v2463_v41  ;;  %v2519_v41 = vld [vmem:[%s2993_s21 + $0x2c8] sm:$0xff]   ;;  %v2546_v12 = vld [vmem:[%s2993_s21 + $0x350] sm:$0xff]  }
  0x7b   : > { %1458 = vmatmul.mubr.bf16.vlgmr.msra.gmra.mxu0 %v1961_v35  ;;  %v2513_v35 = vld [vmem:[%s2993_s21 + $0x298] sm:$0xff]   ;;  %v2547_v13 = vld [vmem:[%s2993_s21 + $0x3d0] sm:$0xff]  }
  0x7c   : > { %1499 = vmatmul.mubr.bf16.vlgmr.msra.gmra.mxu1 %v1963_v38  ;;  %2162 = vmatpush3.bf16.msra.mxu0 %v2464_v42  ;;  %v2516_v38 = vld [vmem:[%s2993_s21 + $0x210] sm:$0xff]   ;;  %v2520_v42 = vld [vmem:[%s2993_s21 + $0x208] sm:$0xff]  }
  0x7d   : > { %2184 = vmatpush3.bf16.msra.mxu1 %v2465_v43  ;;  %2163 = vmatprep.subr.bf16.mxu0 %v2466_v44  ;;  %v2521_v43 = vld [vmem:[%s2993_s21 + $0x288] sm:$0xff]   ;;  %v2522_v44 = vld [vmem:[%s2993_s21 + $0x240] sm:$0xff]  }
  0x7e   : > { %2185 = vmatprep.subr.bf16.mxu1 %v2467_v45  ;;  %1539 = vmatprep.mubr.bf16.mxu0 %v1966_v11  ;;  %v2523_v45 = vld [vmem:[%s2993_s21 + $0x2c0] sm:$0xff]   ;;  %v2545_v11 = vld [vmem:[%s2993_s21 + $0x398] sm:$0xff]  }
  0x7f   : > { %1580 = vmatprep.mubr.bf16.mxu1 %v1968_v15  ;;  %v2549_v15 = vld [vmem:[%s2993_s21 + $0x390] sm:$0xff]  }
  0x80   : > { %2164 = vmatpush3.bf16.msra.mxu0 %v2468_v46  ;;  %v2524_v46 = vld [vmem:[%s2993_s21 + $0x200] sm:$0xff]  }
  0x81   : > { %2186 = vmatpush3.bf16.msra.mxu1 %v2469_v47  ;;  %2165 = vmatprep.subr.bf16.mxu0 %v2470_v48  ;;  %v2525_v47 = vld [vmem:[%s2993_s21 + $0x280] sm:$0xff]  }
  0x82   : > { %2187 = vmatprep.subr.bf16.mxu1 %v2471_v49  ;;  %v309_v48 = vld [vmem:[%s2986_s8 + $0x20] sm:$0xff] }
  0x83   : > { %v317_v49 = vld [vmem:[%s2986_s8 + $0x60] sm:$0xff] }
  0x84   : > { %2166 = vmatpush3.bf16.msra.mxu0 %v2472_v50  ;;  %v310_v50 = vld [vmem:[%s2986_s8 + $0x28] sm:$0xff] }
  0x85   : > { %2188 = vmatpush3.bf16.msra.mxu1 %v2473_v51  ;;  %2167 = vmatprep.subr.bf16.mxu0 %v2474_v52  ;;  %v318_v51 = vld [vmem:[%s2986_s8 + $0x68] sm:$0xff]  ;;  %v1969_v52 = vcombine.low %v309_v48, %v317_v49 }
  0x86   : > { %2189 = vmatprep.subr.bf16.mxu1 %v2475_v53  ;;  %v1970_v53 = vcombine.high %v309_v48, %v317_v49 }
  0x88   : > { %2168 = vmatpush3.bf16.msra.mxu0 %v2476_v54  ;;  %v1971_v54 = vcombine.low %v310_v50, %v318_v51 }
  0x89   : > { %2190 = vmatpush3.bf16.msra.mxu1 %v2477_v55  ;;  %2169 = vmatprep.subr.bf16.mxu0 %v2478_v56  ;;  %v1972_v55 = vcombine.high %v310_v50, %v318_v51  ;;  %v2526_v56 = vld [vmem:[%s2993_s21 + $0x378] sm:$0xff]  }
  0x8a   : > { %2191 = vmatprep.subr.bf16.mxu1 %v2479_v57  ;;  %v2527_v57 = vld [vmem:[%s2993_s21 + $0x3f8] sm:$0xff]  }
  0x8c   : > { %2170 = vmatpush3.bf16.msra.mxu0 %v2480_v58  ;;  %v2528_v58 = vld [vmem:[%s2993_s21 + $0x338] sm:$0xff]  }
  0x8d   : > { %2192 = vmatpush3.bf16.msra.mxu1 %v2481_v59  ;;  %2171 = vmatprep.subr.bf16.mxu0 %v2482_v60  ;;  %v2529_v59 = vld [vmem:[%s2993_s21 + $0x3b8] sm:$0xff]   ;;  %v2530_v60 = vld [vmem:[%s2993_s21 + $0x370] sm:$0xff]  }
  0x8e   : > { %2193 = vmatprep.subr.bf16.mxu1 %v2483_v61  ;;  %v2531_v61 = vld [vmem:[%s2993_s21 + $0x3f0] sm:$0xff]  }
  0x90   : > { %2172 = vmatpush3.bf16.msra.mxu0 %v2484_v62  ;;  %v2532_v62 = vld [vmem:[%s2993_s21 + $0x330] sm:$0xff]  }
  0x91   : > { %2194 = vmatpush3.bf16.msra.mxu1 %v2485_v63  ;;  %2173 = vmatprep.subr.bf16.mxu0 %v2486_v0  ;;  %v2533_v63 = vld [vmem:[%s2993_s21 + $0x3b0] sm:$0xff]   ;;  %v2534_v0 = vld [vmem:[%s2993_s21 + $0x368] sm:$0xff]  }
  0x92   : > { %2195 = vmatprep.subr.bf16.mxu1 %v2487_v1  ;;  %v2535_v1 = vld [vmem:[%s2993_s21 + $0x3e8] sm:$0xff]  }
  0x94   : > { %2174 = vmatpush3.bf16.msra.mxu0 %v2488_v2  ;;  %v2536_v2 = vld [vmem:[%s2993_s21 + $0x328] sm:$0xff]  }
  0x95   : > { %2196 = vmatpush3.bf16.msra.mxu1 %v2489_v3  ;;  %2175 = vmatprep.subr.bf16.mxu0 %v2490_v4  ;;  %v2537_v3 = vld [vmem:[%s2993_s21 + $0x3a8] sm:$0xff]   ;;  %v2538_v4 = vld [vmem:[%s2993_s21 + $0x360] sm:$0xff]  }
  0x96   : > { %2197 = vmatprep.subr.bf16.mxu1 %v2491_v5  ;;  %v2539_v5 = vld [vmem:[%s2993_s21 + $0x3e0] sm:$0xff]  }
  0x98   : > { %2176 = vmatpush3.bf16.msra.mxu0 %v2492_v6  ;;  %v2540_v6 = vld [vmem:[%s2993_s21 + $0x320] sm:$0xff]  }
  0x99   : > { %2198 = vmatpush3.bf16.msra.mxu1 %v2493_v7  ;;  %2205 = vmatprep.subr.bf16.mxu0 %v2494_v16  ;;  %v2541_v7 = vld [vmem:[%s2993_s21 + $0x3a0] sm:$0xff]   ;;  %v2550_v16 = vld [vmem:[%s2993_s21 + $0x348] sm:$0xff]  }
  0x9a   : > { %2227 = vmatprep.subr.bf16.mxu1 %v2495_v17  ;;  %v2551_v17 = vld [vmem:[%s2993_s21 + $0x3c8] sm:$0xff]  }
  0x9b   : > { %1540 = vmatmul.mubr.bf16.vlgmr.msra.gmra.mxu0 %v1965_v10  ;;  %v2544_v10 = vld [vmem:[%s2993_s21 + $0x318] sm:$0xff]  }
  0x9c   : > { %1581 = vmatmul.mubr.bf16.vlgmr.msra.gmra.mxu1 %v1967_v14  ;;  %2206 = vmatpush3.bf16.msra.mxu0 %v2496_v18  ;;  %v2548_v14 = vld [vmem:[%s2993_s21 + $0x310] sm:$0xff]   ;;  %v2552_v18 = vld [vmem:[%s2993_s21 + $0x308] sm:$0xff]  }
  0x9d   : > { %2228 = vmatpush3.bf16.msra.mxu1 %v2497_v19  ;;  %2207 = vmatprep.subr.bf16.mxu0 %v2498_v20  ;;  %v2553_v19 = vld [vmem:[%s2993_s21 + $0x388] sm:$0xff]   ;;  %v2554_v20 = vld [vmem:[%s2993_s21 + $0x340] sm:$0xff]  }
  0x9e   : > { %2229 = vmatprep.subr.bf16.mxu1 %v2499_v21  ;;  %1621 = vmatprep.mubr.bf16.mxu0 %v1970_v53  ;;  %v2555_v21 = vld [vmem:[%s2993_s21 + $0x3c0] sm:$0xff]  }
  0x9f   : > { %1662 = vmatprep.mubr.bf16.mxu1 %v1972_v55 }
  0xa0   : > { %2208 = vmatpush3.bf16.msra.mxu0 %v2500_v22  ;;  %v2556_v22 = vld [vmem:[%s2993_s21 + $0x300] sm:$0xff]  }
  0xa1   : > { %2230 = vmatpush3.bf16.msra.mxu1 %v2501_v23  ;;  %2209 = vmatprep.subr.bf16.mxu0 %v2502_v24  ;;  %v2557_v23 = vld [vmem:[%s2993_s21 + $0x380] sm:$0xff]   ;;  %v311_v24 = vld [vmem:[%s2986_s8 + $0x30] sm:$0xff] }
  0xa2   : > { %2231 = vmatprep.subr.bf16.mxu1 %v2503_v25  ;;  %v319_v25 = vld [vmem:[%s2986_s8 + $0x70] sm:$0xff] }
  0xa4   : > { %2210 = vmatpush3.bf16.msra.mxu0 %v2504_v26  ;;  %v312_v26 = vld [vmem:[%s2986_s8 + $0x38] sm:$0xff] }
  0xa5   : > { %2232 = vmatpush3.bf16.msra.mxu1 %v2505_v27  ;;  %2211 = vmatprep.subr.bf16.mxu0 %v2506_v28  ;;  %v1973_v27 = vcombine.low %v311_v24, %v319_v25  ;;  %v1974_v28 = vcombine.high %v311_v24, %v319_v25 }
  0xa6   : > { %2233 = vmatprep.subr.bf16.mxu1 %v2507_v29  ;;  %v320_v29 = vld [vmem:[%s2986_s8 + $0x78] sm:$0xff] }
  0xa8   : > { %2212 = vmatpush3.bf16.msra.mxu0 %v2508_v30  ;;  %v1975_v30 = vcombine.low %v312_v26, %v320_v29 }
  0xa9   : > { %2234 = vmatpush3.bf16.msra.mxu1 %v2509_v31  ;;  %2213 = vmatprep.subr.bf16.mxu0 %v2510_v32  ;;  %v1976_v31 = vcombine.high %v312_v26, %v320_v29 }
  0xaa   : > { %2235 = vmatprep.subr.bf16.mxu1 %v2511_v33 }
  0xac   : > { %2214 = vmatpush3.bf16.msra.mxu0 %v2512_v34 }
  0xad   : > { %2236 = vmatpush3.bf16.msra.mxu1 %v2513_v35  ;;  %2215 = vmatprep.subr.bf16.mxu0 %v2514_v36 }
  0xae   : > { %2237 = vmatprep.subr.bf16.mxu1 %v2515_v37 }
  0xb0   : > { %2216 = vmatpush3.bf16.msra.mxu0 %v2516_v38 }
  0xb1   : > { %2238 = vmatpush3.bf16.msra.mxu1 %v2517_v39  ;;  %2217 = vmatprep.subr.bf16.mxu0 %v2518_v40 }
  0xb2   : > { %2239 = vmatprep.subr.bf16.mxu1 %v2519_v41 }
  0xb4   : > { %2218 = vmatpush3.bf16.msra.mxu0 %v2520_v42 }
  0xb5   : > { %2240 = vmatpush3.bf16.msra.mxu1 %v2521_v43  ;;  %2219 = vmatprep.subr.bf16.mxu0 %v2522_v44 }
  0xb6   : > { %2241 = vmatprep.subr.bf16.mxu1 %v2523_v45 }
  0xb8   : > { %2220 = vmatpush3.bf16.msra.mxu0 %v2524_v46 }
  0xb9   : > { %2242 = vmatpush3.bf16.msra.mxu1 %v2525_v47  ;;  %2249 = vmatprep.subr.bf16.mxu0 %v2526_v56 }
  0xba   : > { %2271 = vmatprep.subr.bf16.mxu1 %v2527_v57 }
  0xbb   : > { %1622 = vmatmul.mubr.bf16.vlgmr.msra.gmra.mxu0 %v1969_v52 }
  0xbc   : > { %1663 = vmatmul.mubr.bf16.vlgmr.msra.gmra.mxu1 %v1971_v54  ;;  %2250 = vmatpush3.bf16.msra.mxu0 %v2528_v58 }
  0xbd   : > { %2272 = vmatpush3.bf16.msra.mxu1 %v2529_v59  ;;  %2251 = vmatprep.subr.bf16.mxu0 %v2530_v60 }
  0xbe   : > { %2273 = vmatprep.subr.bf16.mxu1 %v2531_v61  ;;  %1703 = vmatprep.mubr.bf16.mxu0 %v1974_v28 }
  0xbf   : > { %1744 = vmatprep.mubr.bf16.mxu1 %v1976_v31 }
  0xc0   : > { %2252 = vmatpush3.bf16.msra.mxu0 %v2532_v62 }
  0xc1   : > { %2274 = vmatpush3.bf16.msra.mxu1 %v2533_v63  ;;  %2253 = vmatprep.subr.bf16.mxu0 %v2534_v0 }
  0xc2   : > { %2275 = vmatprep.subr.bf16.mxu1 %v2535_v1 }
  0xc4   : > { %2254 = vmatpush3.bf16.msra.mxu0 %v2536_v2 }
  0xc5   : > { %2276 = vmatpush3.bf16.msra.mxu1 %v2537_v3  ;;  %2255 = vmatprep.subr.bf16.mxu0 %v2538_v4 }
  0xc6   : > { %2277 = vmatprep.subr.bf16.mxu1 %v2539_v5 }
  0xc8   : > { %2256 = vmatpush3.bf16.msra.mxu0 %v2540_v6 }
  0xc9   : > { %2278 = vmatpush3.bf16.msra.mxu1 %v2541_v7  ;;  %2257 = vmatprep.subr.bf16.mxu0 %v2542_v8 }
  0xca   : > { %2279 = vmatprep.subr.bf16.mxu1 %v2543_v9 }
  0xcc   : > { %2258 = vmatpush3.bf16.msra.mxu0 %v2544_v10 }
  0xcd   : > { %2280 = vmatpush3.bf16.msra.mxu1 %v2545_v11  ;;  %2259 = vmatprep.subr.bf16.mxu0 %v2546_v12 }
  0xce   : > { %2281 = vmatprep.subr.bf16.mxu1 %v2547_v13 }
  0xd0   : > { %2260 = vmatpush3.bf16.msra.mxu0 %v2548_v14 }
  0xd1   : > { %2282 = vmatpush3.bf16.msra.mxu1 %v2549_v15  ;;  %2261 = vmatprep.subr.bf16.mxu0 %v2550_v16 }
  0xd2   : > { %2283 = vmatprep.subr.bf16.mxu1 %v2551_v17 }
  0xd4   : > { %2262 = vmatpush3.bf16.msra.mxu0 %v2552_v18 }
  0xd5   : > { %2284 = vmatpush3.bf16.msra.mxu1 %v2553_v19  ;;  %2263 = vmatprep.subr.bf16.mxu0 %v2554_v20 }
  0xd6   : > { %2285 = vmatprep.subr.bf16.mxu1 %v2555_v21 }
  0xd8   : > { %2264 = vmatpush3.bf16.msra.mxu0 %v2556_v22 }
  0xd9   : > { %2286 = vmatpush3.bf16.msra.mxu1 %v2557_v23 }
  0xdb   : > { %1704 = vmatmul.mubr.bf16.vlgmr.msra.gmra.mxu0 %v1973_v27 }
  0xdc   : > { %1745 = vmatmul.mubr.bf16.vlgmr.msra.gmra.mxu1 %v1975_v30 }
 0x13b   : > { %v2133_v32 = vpop.f32.mrf.mxu0 }
 0x13c   : > { %v2155_v33 = vpop.f32.mrf.mxu1 }
 0x13d   : > { %v2134_v34 = vpop.f32.mrf.mxu0 }
 0x13e   : > { %v2156_v35 = vpop.f32.mrf.mxu1  ;;  %v2135_v49 = vadd.f32 %v2134_v34, %v2133_v32 }
 0x13f   : > { %v2136_v36 = vpop.f32.mrf.mxu0  ;;  %v2157_v50 = vadd.f32 %v2156_v35, %v2155_v33 }
 0x140   : > { %v2158_v37 = vpop.f32.mrf.mxu1 }
 0x141   : > { %v2137_v38 = vpop.f32.mrf.mxu0  ;;  %v1501_v54 = vadd.f32 %v2157_v50, %v2135_v49 }
 0x142   : > { %v2159_v40 = vpop.f32.mrf.mxu1  ;;  %v2138_v55 = vadd.f32 %v2137_v38, %v2136_v36 }
 0x143   : > { %v2160_v56 = vadd.f32 %v2159_v40, %v2158_v37 }
 0x145   : > { %v1504_v62 = vadd.f32 %v2160_v56, %v2138_v55 }
 0x15b   : > { %v2177_v39 = vpop.f32.mrf.mxu0 }
 0x15c   : > { %v2199_v41 = vpop.f32.mrf.mxu1 }
 0x15d   : > { %v2178_v42 = vpop.f32.mrf.mxu0 }
 0x15e   : > { %v2200_v43 = vpop.f32.mrf.mxu1  ;;  %v2179_v53 = vadd.f32 %v2178_v42, %v2177_v39 }
 0x15f   : > { %v2180_v44 = vpop.f32.mrf.mxu0  ;;  %v2201_v60 = vadd.f32 %v2200_v43, %v2199_v41 }
 0x160   : > { %v2202_v45 = vpop.f32.mrf.mxu1  ;;  %v1542_v59 = vadd.f32 %v2179_v53, %v1501_v54 }
 0x161   : > { %v2181_v46 = vpop.f32.mrf.mxu0 }
 0x162   : > { %v2203_v48 = vpop.f32.mrf.mxu1  ;;  %v2182_v61 = vadd.f32 %v2181_v46, %v2180_v44  ;;  %v1583_v2 = vadd.f32 %v2201_v60, %v1542_v59 }
 0x163   : > { %v2204_v4 = vadd.f32 %v2203_v48, %v2202_v45 }
 0x164   : > { %v1545_v3 = vadd.f32 %v2182_v61, %v1504_v62 }
 0x166   : > { %v1586_v10 = vadd.f32 %v2204_v4, %v1545_v3 }
 0x17b   : > { %v2221_v47 = vpop.f32.mrf.mxu0 }
 0x17c   : > { %v2243_v51 = vpop.f32.mrf.mxu1 }
 0x17d   : > { %v2222_v52 = vpop.f32.mrf.mxu0 }
 0x17e   : > { %v2244_v57 = vpop.f32.mrf.mxu1  ;;  %v2223_v63 = vadd.f32 %v2222_v52, %v2221_v47 }
 0x17f   : > { %v2224_v58 = vpop.f32.mrf.mxu0  ;;  %v2245_v6 = vadd.f32 %v2244_v57, %v2243_v51 }
 0x180   : > { %v2246_v0 = vpop.f32.mrf.mxu1  ;;  %v1624_v5 = vadd.f32 %v2223_v63, %v1583_v2 }
 0x181   : > { %v2225_v1 = vpop.f32.mrf.mxu0 }
 0x182   : > { %v2226_v7 = vadd.f32 %v2225_v1, %v2224_v58  ;;  %v2247_v8 = vpop.f32.mrf.mxu1  ;;  %v1665_v13 = vadd.f32 %v2245_v6, %v1624_v5 }
 0x183   : > { %v2248_v18 = vadd.f32 %v2247_v8, %v2246_v0 }
 0x184   : > { %v1627_v14 = vadd.f32 %v2226_v7, %v1586_v10 }
 0x186   : > { %v1668_v23 = vadd.f32 %v2248_v18, %v1627_v14 }
 0x19b   : > { %v2265_v9 = vpop.f32.mrf.mxu0 }
 0x19c   : > { %v2287_v11 = vpop.f32.mrf.mxu1 }
 0x19d   : > { %v2266_v12 = vpop.f32.mrf.mxu0 }
 0x19e   : > { %v2267_v15 = vadd.f32 %v2266_v12, %v2265_v9  ;;  %v2288_v16 = vpop.f32.mrf.mxu1 }
 0x19f   : > { %v2268_v17 = vpop.f32.mrf.mxu0  ;;  %v2289_v20 = vadd.f32 %v2288_v16, %v2287_v11 }
 0x1a0   : > { %v1706_v19 = vadd.f32 %v2267_v15, %v1665_v13  ;;  %v2290_v21 = vpop.f32.mrf.mxu1 }
 0x1a1   : > { %v2269_v22 = vpop.f32.mrf.mxu0 }
 0x1a2   : > { %v1747_v24 = vadd.f32 %v2289_v20, %v1706_v19  ;;  %v2270_v25 = vadd.f32 %v2269_v22, %v2268_v17  ;;  %v2291_v26 = vpop.f32.mrf.mxu1  ;;  %1756 = sbr.rel (%p2105_p11) target bundleno = 425 (0x1a9), region = 44 }
 0x1a3   : > { %v2292_v28 = vadd.f32 %v2291_v26, %v2290_v21 }
 0x1a4   : > { %v1709_v27 = vadd.f32 %v2270_v25, %v1668_v23 }
 0x1a6   : > { %v1750_v29 = vadd.f32 %v2292_v28, %v1709_v27 }
 0x1a7   : > { %1757 = vst [vmem:[#allocation2] sm:$0xff] %v1747_v24 }
 0x1a8   : > { %1758 = vst [vmem:[#allocation2 + $0x8] sm:$0xff] %v1750_v29 }
 0x1a9 PF: > { %s3271_s26 = sld [smem:[#allocation12_spill]] }
 0x1af   : > { %p2106_p1 = scmp.le.s32.totalorder %s3271_s26, 0 }
 0x1b1   : > { %1762 = sbr.rel (%p2106_p1) target bundleno = 442 (0x1ba), region = 48 }
 0x1b6   : > { %v1763_v30 = vld [vmem:[#allocation2] sm:$0xff]  ;;  %v1764_v31 = vld [vmem:[#allocation2 + $0x8] sm:$0xff] }
 0x1b7   : > { %v1765_v32 = vadd.f32 %v1763_v30, %v1747_v24  ;;  %v1766_v33 = vadd.f32 %v1764_v31, %v1750_v29 }
 0x1b9   : > { %1767 = vst [vmem:[#allocation2] sm:$0xff] %v1765_v32  ;;  %1768 = vst [vmem:[#allocation2 + $0x8] sm:$0xff] %v1766_v33 }
 0x1ba PF: > { %s3272_s2 = sld [smem:[#allocation12_spill]] }
 0x1c0   : > { %p2107_p3 = scmp.ne.s32.totalorder %s3272_s2, 1 }
 0x1c1   : > { %s3273_s15 = sld [smem:[#allocation18_spill]] (!%p2107_p3) }
 0x1c2   : > { %1772 = sbr.rel (%p2107_p3) target bundleno = 460 (0x1cc), region = 52 }
 0x1c7   : > { %v1773_v34 = vld [vmem:[#allocation2] sm:$0xff]  ;;  %v1774_v36 = vld [vmem:[#allocation2 + $0x8] sm:$0xff] }
 0x1c8   : > { %v2108_v35 = vld [vmem:[%s3273_s15] ss:$0 sm:$0xff] }
 0x1c9   : > { %v1782_v37 = vadd.f32 %v2108_v35, %v1773_v34  ;;  %v1783_v38 = vadd.f32 %v2108_v35, %v1774_v36 }
 0x1cb   : > { %1784 = vst [vmem:[%s293_s29] sm:$0xff] %v1782_v37  ;;  %1785 = vst [vmem:[%s293_s29 + $0x8] sm:$0xff] %v1783_v38 }
 0x1cc PF: > { %s3274_s24 = sld [smem:[#allocation13_spill]]  ;;  %s1803_s21 = sshll.u32 %s293_s29, 4  ;;  %s3161_s21 = int_to_ptr.vmem [resolvable:$true] %s1803_s21 }
 0x1cd   : > { %s3275_s6 = sld [smem:[#allocation19_spill]]  ;;  %s3165_s27 = scalar_lea.sflag [#allocation5], %s291_s11 }
 0x1ce   : > { %s2614_s7 = scalar_lea.vmem %s3161_s21, 256  ;;  %s2770_s26 = smov [#allocation8]  }
 0x1cf   : > { %p2615_p13 = scmp.ne.s32.totalorder %s3161_s21, %s2614_s7  ;;  %s2618_s2 = sshll.u32 %s2770_s26, 4  ;;  %s2619_s2 = int_to_ptr.vmem [resolvable:$false] %s2618_s2 }
 0x1d0   : > { %s2620_s4 = scalar_lea.vmem %s2619_s2, 512  ;;  %p2621_p0 = scmp.lt.s32.totalorder %s3161_s21, %s2619_s2 }
 0x1d1   : > { %p2616_p2 = pnand %p2615_p13, %p2956_p6  ;;  %p2622_p9 = scmp.lt.s32.totalorder %s2620_s4, %s2614_s7 }
 0x1d2   : > { %s2116_s30 = sshll.u32 %s3274_s24, 8 }
 0x1d3   : > { %s3159_s5 = scalar_lea.hbm %s3275_s6, %s2116_s30  ;;  %p2617_p12 = pneg %p2616_p2 }
 0x1d4   : > { %p2623_p4 = por %p2622_p9, %p2621_p0 }
 0x1d6   : > { %p2624_p7 = pnand %p2623_p4, %p2617_p12 }
 0x1d8   : > { %2627 = shalt.err (!%p2624_p7)
}
 0x1d9   : > { %s2628_s11 = scalar_lea.hbm %s3159_s5, 256  ;;  %s2632_s15 = scalar_lea.hbm %s3275_s6, 768 }
 0x1da   : > { %p2629_p5 = scmp.ne.s32.totalorder %s3159_s5, %s2628_s11  ;;  %p2633_p11 = scmp.lt.s32.totalorder %s3159_s5, %s3275_s6 }
 0x1db   : > { %p2634_p1 = scmp.lt.s32.totalorder %s2632_s15, %s2628_s11 }
 0x1dc   : > { %p2630_p8 = pnand %p2629_p5, %p2956_p6 }
 0x1dd   : > { %p2635_p3 = por %p2634_p1, %p2633_p11 }
 0x1de   : > { %p2631_p10 = pneg %p2630_p8 }
 0x1e0   : > { %p2636_p13 = pnand %p2635_p3, %p2631_p10 }
 0x1e2   : > { %2639 = shalt.err (!%p2636_p13)
}
 0x1e3   : > { %s2771_s8 = smov 128   ;;  %s2772_s0 = smov 8  }
 0x1e4   : > { %2297 = dma.vmem_to_hbm [thread:$0]  (%p2956_p6), %s3161_s21, 256, %s3159_s5, %s3165_s27, %s2771_s8, %s2771_s8, %s2772_s0  }
 0x1e5 PF: > { %p2311_p2 = scmp.ge.s32.totalorder %s2762_s25, 2  ;;  %s1818_s7 = sand.u32 1, %s2710_s12  }
 0x1e6   : > { %p3276_p12 = scmp.ne.s32.totalorder %s3266_s28, 0  ;;  %s1819_s26 = scalar_lea.sflag [#allocation5], %s1818_s7 }
 0x1e8   : > { %p2307_p0 = pnand %p2311_p2, %p3276_p12 }
 0x1ea   : > { %p2308_p9 = pneg %p2307_p0 }
 0x1ec   : > { %2705 = dma.done.wait (%p2308_p9), %s1819_s26, 256  }
 0x1ed   : > { %2707 = vsyncadd (%p2308_p9), %s1819_s26, 4294967040  ;;  %s22_s25 = sadd.s32 1, %s2762_s25   ;;  %s3278_s28 = sld [smem:[#allocation14_spill]] }
 0x1ee   : > { %p3193_p4 = scmp.ge.s32.totalorder %s22_s25, 8   ;;  %s3279_s5 = sld [smem:[#allocation15_spill]] }
 0x1ef   : > { %s3280_s24 = sld [smem:[#allocation16_spill]]  ;;  %s3281_s12 = smov %s2714_s13 }
 0x1f0   : > { %s3282_s13 = smov %s2718_s14  ;;  %s3283_s14 = smov %s2893_s9 }
 0x1f1   : > { %s3284_s15 = smov %s2726_s16  ;;  %s3285_s16 = smov %s2730_s17 }
 0x1f2   : > { %s3286_s17 = smov %s2940_s22  ;;  %s3287_s18 = smov %s2738_s19 }
 0x1f3   : > { %s3288_s19 = smov %s2742_s20  ;;  %s3289_s20 = smov %s2896_s10 }
 0x1f4   : > { %s3290_s21 = smov %s2754_s23  ;;  %s3291_s22 = smov %s3278_s28 }
 0x1f5   : > { %s3292_s23 = smov %s3279_s5  ;;  %21 = sbr.rel (!%p3193_p4) target bundleno = 16 (0x10), region = 105 }
 0x1fa   :  { %1824 = vsyncpa [#allocation4], 1 }
 0x1fb   :  { %1826 = vsyncpa [#allocation4 + $0x1], 1 }
 0x1fc   :  { %1827 = vsyncpa [#allocation7], 1 }
 0x1fd   :  { %1829 = vsyncpa [#allocation7 + $0x1], 1 }
 0x1fe   :  { %1830 = vsyncpa [#allocation5], 1 }
 0x1ff   :  { %1832 = vsyncpa [#allocation5 + $0x1], 1 }

</bundles_post_ra>
